<compile_context>
chip_gen: v7x
topology: tpu7x:2x2x1
jax: 0.10.0
libtpu: 0.0.40
codegen_flags: <defaults>
</compile_context>

<pallas_src>
import functools

import numpy as np

import jax
import jax.numpy as jnp
from jax.experimental import pallas as pl
from jax.experimental.pallas import tpu as pltpu


def _gat_fused_kernel(x_ref, adj_ref, wbig_ref, out_ref, *, leak, num_heads, f_out):
    """One grid step == one graph. Blocks are the full (small) per-graph arrays."""
    n = x_ref.shape[0]
    x = x_ref[...]                                    # (N, F_in)            f32
    w_big = wbig_ref[...]                             # (F_in, H*F_out+2H)   f32
    # adj travels as int8; widen in-register for a layout-uniform f32 mask select.
    edge = adj_ref[...].astype(jnp.float32) > 0.0     # (N, N) bool

    hf = num_heads * f_out

    # One f32 MXU pass produces, for every head h:
    #   cols [h*F_out,(h+1)*F_out) : Wh = x @ W[h]
    #   col  hf+h                  : e_src[:, h] = Wh · a_src[h]
    #   col  hf+H+h                : e_dst[:, h] = Wh · a_dst[h]
    # (Kept f32: tiny cost, and these logits feed exp() which would amplify bf16
    #  operand quantization.)
    big = jnp.dot(x, w_big, preferred_element_type=jnp.float32)    # (N, hf+2H)

    e_src_all = big[:, hf:hf + num_heads]                          # (N, H)
    e_dst_rows = big[:, hf + num_heads:hf + 2 * num_heads].T       # (H, N); one transpose for all heads

    ones_col = jnp.ones((n, 1), jnp.float32)                       # hoisted; shared by all heads
    neg_big = jnp.float32(-9e15)

    # TODO(synk): for large F_out/H, collapse the H per-head p@Wh products into one
    # block-diagonal MXU push; at H=4, F_out=8 the relayout to build the block-diagonal
    # RHS costs more than the extra (tiny) MXU pushes.
    # TODO(synk): for large N, tile the neighbor axis with an online-softmax loop
    # (int8 adj tiles, budgeted for v7x's 64 MiB VMEM).
    for h in range(num_heads):                                     # unrolled: H static & small
        wh = big[:, h * f_out:(h + 1) * f_out]                     # (N, F_out) f32

        # e_ij = LeakyReLU(e_src_i + e_dst_j), masked to edges (VPU, f32).
        e = e_src_all[:, h:h + 1] + e_dst_rows[h:h + 1, :]         # (N, N)
        e = jnp.where(e > 0, e, leak * e)
        e = jnp.where(edge, e, neg_big)

        # Numerically-stable softmax numerator (elementwise math stays f32).
        m = jnp.max(e, axis=-1, keepdims=True)                     # (N, 1)
        p = jnp.exp(e - m)                                         # (N, N), values in (0, 1]

        # Attention-apply AND the softmax denominator in ONE bf16 MXU matmul:
        #   p @ [Wh | 1]  ->  [unnormalized out | row_sum(p)]
        whx = jnp.concatenate([wh, ones_col], axis=-1).astype(jnp.bfloat16)   # (N, F_out+1)
        ne = jnp.dot(p.astype(jnp.bfloat16), whx,
                     preferred_element_type=jnp.float32)           # (N, F_out+1), f32 accum
        num = ne[:, :f_out]
        den = ne[:, f_out:f_out + 1]                               # >= 1 (row max contributes exp(0)=1)

        # Exact reciprocal (EUP); approx=True was flagged in the correctness review.
        out_ref[:, h * f_out:(h + 1) * f_out] = (num * pl.reciprocal(den)).astype(out_ref.dtype)


def simplified_gat_layer(x, adj, W, a_src, a_dst, *, leak=0.2, concat=True, activate=False):
    """Forward pass of SimplifiedGATLayer (inference mode: dropout is identity).

    x:   (N, F_in) or (B, N, F_in);   adj: (N, N) or (B, N, N)  (nonzero == edge)
    W: (H, F_in, F_out),  a_src/a_dst: (H, 1, F_out)
    Returns (..., N, H*F_out) if concat else (..., N, F_out).
    """
    single = (x.ndim == 2)
    if single:
        x, adj = x[None], adj[None]
    B, N, F_in = x.shape
    H, _, F_out = W.shape

    # --- parameter folding (tiny, done once, exact f32 elementwise — no matmul) ---
    w_all = jnp.transpose(W, (1, 0, 2)).reshape(F_in, H * F_out)    # column block h == W[h]
    a_src_fold = jnp.sum(W * a_src, axis=-1).T                      # (F_in, H): x @ col == Wh·a_src
    a_dst_fold = jnp.sum(W * a_dst, axis=-1).T                      # (F_in, H)
    w_big = jnp.concatenate([w_all, a_src_fold, a_dst_fold], axis=1).astype(jnp.float32)
    cols = H * F_out + 2 * H

    adj_i8 = (adj != 0).astype(jnp.int8)        # the only O(N^2) input travels as int8

    out = pl.pallas_call(
        functools.partial(_gat_fused_kernel, leak=float(leak), num_heads=H, f_out=F_out),
        out_shape=jax.ShapeDtypeStruct((B, N, H * F_out), jnp.float32),
        grid_spec=pltpu.PrefetchScalarGridSpec(
            num_scalar_prefetch=0,
            grid=(B,),                                              # one graph per grid step
            in_specs=[
                pl.BlockSpec((None, N, F_in), lambda b: (b, 0, 0)),        # x
                pl.BlockSpec((None, N, N), lambda b: (b, 0, 0)),           # adj (int8)
                pl.BlockSpec((F_in, cols), lambda b: (0, 0)),              # fused weights (shared)
            ],
            out_specs=pl.BlockSpec((None, N, H * F_out), lambda b: (b, 0, 0)),
        ),
        compiler_params=pltpu.CompilerParams(
            dimension_semantics=("parallel",)),                     # megacore-shardable on v7x
    )(x.astype(jnp.float32), adj_i8, w_big)                          # (B, N, H*F_out), lane-dense

    if single:
        out = out[0]
    if not concat:
        out = out.reshape(*out.shape[:-1], H, F_out).sum(axis=-2)
    if activate:
        out = jax.nn.elu(out)
    # TODO(synk): training-mode dropout (on input and output) not implemented (eval mode).
    return out


def _reference_np(x, adj, W, a_src, a_dst, leak=0.2):
    """float64 numpy reference for a single graph (exact module semantics, eval mode)."""
    x = np.asarray(x, np.float64)
    adj = np.asarray(adj, np.float64)
    W = np.asarray(W, np.float64)
    a_src = np.asarray(a_src, np.float64)
    a_dst = np.asarray(a_dst, np.float64)
    outs = []
    for h in range(W.shape[0]):
        wh = x @ W[h]                                               # (N, F_out)
        e = (wh @ a_src[h, 0])[:, None] + (wh @ a_dst[h, 0])[None, :]
        e = np.where(e > 0, e, leak * e)
        e = np.where(adj > 0, e, -9e15)
        e = e - e.max(axis=-1, keepdims=True)
        p = np.exp(e)
        attn = p / p.sum(axis=-1, keepdims=True)
        outs.append(attn @ wh)
    return np.concatenate(outs, axis=1)


if __name__ == "__main__":
    # Module config: ins=16, outs=8, dropout (inactive in eval), leak=0.2, N_mechs=4,
    # concat=True, activate=False.  Batched over B=4 graphs (perf review: parallel grid axis).
    B, N, F_IN, F_OUT, H = 4, 16, 16, 8, 4
    LEAK = 0.2

    key = jax.random.PRNGKey(0)
    kx, ka, kw, k1, k2 = jax.random.split(key, 5)

    x = jax.random.normal(kx, (B, N, F_IN), dtype=jnp.float32)
    # Symmetric 0/1 adjacency with self-loops, per graph.
    a_rand = jax.random.uniform(ka, (B, N, N))
    adj = (a_rand + jnp.swapaxes(a_rand, -1, -2) > 1.0).astype(jnp.float32)
    adj = jnp.maximum(adj, jnp.eye(N, dtype=jnp.float32))

    W = jax.random.normal(kw, (H, F_IN, F_OUT), dtype=jnp.float32) * 0.3
    a_src = jax.random.normal(k1, (H, 1, F_OUT), dtype=jnp.float32) * 0.3
    a_dst = jax.random.normal(k2, (H, 1, F_OUT), dtype=jnp.float32) * 0.3

    out = simplified_gat_layer(x, adj, W, a_src, a_dst, leak=LEAK, concat=True, activate=False)
    out = jax.block_until_ready(out)
    assert out.shape == (B, N, H * F_OUT), out.shape

    ref = np.stack([_reference_np(x[b], adj[b], W, a_src, a_dst, leak=LEAK) for b in range(B)])
    out64 = np.asarray(out, dtype=np.float64)
    max_err = float(np.max(np.abs(out64 - ref)))
    # Error budget: bf16 operands in the attention-apply matmul (~2^-9 relative on p / Wh)
    # plus fused-matmul reassociation -> |err| ~ O(1e-2) at these magnitudes; 5e-2 = margin.
    assert np.allclose(out64, ref, atol=5e-2, rtol=5e-2), f"mismatch, max|err|={max_err}"

    # Single-graph (module-shaped) API path.
    out1 = jax.block_until_ready(
        simplified_gat_layer(x[0], adj[0], W, a_src, a_dst, leak=LEAK))
    assert out1.shape == (N, H * F_OUT), out1.shape
    assert np.allclose(np.asarray(out1, dtype=np.float64), ref[0], atol=5e-2, rtol=5e-2)

    print("KERNEL_OK")
</pallas_src>

<mosaic_0001>
module attributes {stable_mosaic.version = 11 : i64} {
  func.func @_gat_fused_kernel(%arg0: i32, %arg1: memref<1x16x16xf32, #tpu.memory_space<vmem>>, %arg2: memref<1x16x16xi8, #tpu.memory_space<vmem>>, %arg3: memref<16x40xf32, #tpu.memory_space<vmem>>, %arg4: memref<1x16x32xf32, #tpu.memory_space<vmem>>) attributes {dimension_semantics = [#tpu.dimension_semantics<parallel>], iteration_bounds = array<i64: 4>, scalar_prefetch = 0 : i64, scratch_operands = 0 : i64, tpu.core_type = #tpu.core_type<tc>, window_params = [{transform_indices = @transform_0, window_bounds = array<i64: 1, 16, 16>}, {transform_indices = @transform_1, window_bounds = array<i64: 1, 16, 16>}, {pipeline_mode = #tpu.pipeline_mode<synchronous>, transform_indices = @transform_2, window_bounds = array<i64: 16, 40>}, {transform_indices = @transform_3, window_bounds = array<i64: 1, 16, 32>}]} {
    %c0 = arith.constant 0 : index
    %c0_0 = arith.constant 0 : index
    %c0_1 = arith.constant 0 : index
    %0 = vector.load %arg1[%c0, %c0_0, %c0_1] : memref<1x16x16xf32, #tpu.memory_space<vmem>>, vector<1x16x16xf32>
    %1 = vector.shape_cast %0 : vector<1x16x16xf32> to vector<16x16xf32>
    %c0_2 = arith.constant 0 : index
    %c0_3 = arith.constant 0 : index
    %2 = vector.load %arg3[%c0_2, %c0_3] : memref<16x40xf32, #tpu.memory_space<vmem>>, vector<16x40xf32>
    %c0_4 = arith.constant 0 : index
    %c0_5 = arith.constant 0 : index
    %c0_6 = arith.constant 0 : index
    %3 = vector.load %arg2[%c0_4, %c0_5, %c0_6] : memref<1x16x16xi8, #tpu.memory_space<vmem>>, vector<1x16x16xi8>
    %4 = vector.shape_cast %3 : vector<1x16x16xi8> to vector<16x16xi8>
    %5 = arith.sitofp %4 : vector<16x16xi8> to vector<16x16xf32>
    %cst = arith.constant 0.000000e+00 : f32
    %6 = vector.broadcast %cst : f32 to vector<16x16xf32>
    %7 = arith.cmpf ogt, %5, %6 : vector<16x16xf32>
    %cst_7 = arith.constant dense<0.000000e+00> : vector<16x40xf32>
    %8 = tpu.matmul %1, %2, %cst_7 {dimension_numbers = #tpu.dot_dimension_numbers<[1], [0], [0], [1], [0, 0, 1, 1], [], []>} : vector<16x16xf32>, vector<16x40xf32>, vector<16x40xf32> -> vector<16x40xf32>
    %9 = vector.extract_strided_slice %8 {offsets = [0, 32], sizes = [16, 4], strides = [1, 1]} : vector<16x40xf32> to vector<16x4xf32>
    %10 = vector.extract_strided_slice %8 {offsets = [0, 36], sizes = [16, 4], strides = [1, 1]} : vector<16x40xf32> to vector<16x4xf32>
    %11 = tpu.transpose %10, [1, 0] : vector<16x4xf32> -> vector<4x16xf32>
    %cst_8 = arith.constant 1.000000e+00 : f32
    %12 = vector.broadcast %cst_8 : f32 to vector<16x1xf32>
    %13 = vector.extract_strided_slice %8 {offsets = [0, 0], sizes = [16, 8], strides = [1, 1]} : vector<16x40xf32> to vector<16x8xf32>
    %14 = vector.extract_strided_slice %9 {offsets = [0, 0], sizes = [16, 1], strides = [1, 1]} : vector<16x4xf32> to vector<16x1xf32>
    %15 = vector.extract_strided_slice %11 {offsets = [0, 0], sizes = [1, 16], strides = [1, 1]} : vector<4x16xf32> to vector<1x16xf32>
    %16 = vector.broadcast %14 : vector<16x1xf32> to vector<16x16xf32>
    %17 = vector.broadcast %15 : vector<1x16xf32> to vector<16x16xf32>
    %18 = arith.addf %16, %17 : vector<16x16xf32>
    %cst_9 = arith.constant 0.000000e+00 : f32
    %19 = vector.broadcast %cst_9 : f32 to vector<16x16xf32>
    %20 = arith.cmpf ogt, %18, %19 : vector<16x16xf32>
    %cst_10 = arith.constant 2.000000e-01 : f32
    %21 = vector.broadcast %cst_10 : f32 to vector<16x16xf32>
    %22 = arith.mulf %21, %18 : vector<16x16xf32>
    %23 = arith.select %20, %18, %22 : vector<16x16xi1>, vector<16x16xf32>
    %cst_11 = arith.constant -9.000000e+15 : f32
    %24 = vector.broadcast %cst_11 : f32 to vector<16x16xf32>
    %25 = arith.select %7, %23, %24 : vector<16x16xi1>, vector<16x16xf32>
    %cst_12 = arith.constant dense<0xFF800000> : vector<16xf32>
    %26 = vector.multi_reduction <maximumf>, %25, %cst_12 [1] : vector<16x16xf32> to vector<16xf32>
    %27 = vector.shape_cast %26 : vector<16xf32> to vector<16x1xf32>
    %28 = vector.broadcast %27 : vector<16x1xf32> to vector<16x16xf32>
    %29 = arith.subf %25, %28 : vector<16x16xf32>
    %30 = math.exp %29 : vector<16x16xf32>
    %31 = tpu.concatenate %13, %12 in 1 : vector<16x8xf32>, vector<16x1xf32> -> vector<16x9xf32>
    %32 = arith.truncf %31 : vector<16x9xf32> to vector<16x9xbf16>
    %33 = arith.truncf %30 : vector<16x16xf32> to vector<16x16xbf16>
    %cst_13 = arith.constant dense<0.000000e+00> : vector<16x9xf32>
    %34 = tpu.matmul %33, %32, %cst_13 {dimension_numbers = #tpu.dot_dimension_numbers<[1], [0], [0], [1], [0, 0, 1, 1], [], []>} : vector<16x16xbf16>, vector<16x9xbf16>, vector<16x9xf32> -> vector<16x9xf32>
    %35 = vector.extract_strided_slice %34 {offsets = [0, 0], sizes = [16, 8], strides = [1, 1]} : vector<16x9xf32> to vector<16x8xf32>
    %36 = vector.extract_strided_slice %34 {offsets = [0, 8], sizes = [16, 1], strides = [1, 1]} : vector<16x9xf32> to vector<16x1xf32>
    %37 = tpu.reciprocal %36 : vector<16x1xf32> -> vector<16x1xf32>
    %38 = vector.broadcast %37 : vector<16x1xf32> to vector<16x8xf32>
    %39 = arith.mulf %35, %38 : vector<16x8xf32>
    %c0_14 = arith.constant 0 : index
    %c0_15 = arith.constant 0 : index
    %c0_16 = arith.constant 0 : index
    %40 = vector.load %arg4[%c0_14, %c0_15, %c0_16] : memref<1x16x32xf32, #tpu.memory_space<vmem>>, vector<1x16x8xf32>
    %41 = vector.shape_cast %40 : vector<1x16x8xf32> to vector<16x8xf32>
    %42 = vector.shape_cast %39 : vector<16x8xf32> to vector<1x16x8xf32>
    tpu.vector_store %arg4[%c0_14, %c0_15, %c0_16], %42 {strides = array<i32>} : memref<1x16x32xf32, #tpu.memory_space<vmem>>, vector<1x16x8xf32>,
    %43 = vector.extract_strided_slice %8 {offsets = [0, 8], sizes = [16, 8], strides = [1, 1]} : vector<16x40xf32> to vector<16x8xf32>
    %44 = vector.extract_strided_slice %9 {offsets = [0, 1], sizes = [16, 1], strides = [1, 1]} : vector<16x4xf32> to vector<16x1xf32>
    %45 = vector.extract_strided_slice %11 {offsets = [1, 0], sizes = [1, 16], strides = [1, 1]} : vector<4x16xf32> to vector<1x16xf32>
    %46 = vector.broadcast %44 : vector<16x1xf32> to vector<16x16xf32>
    %47 = vector.broadcast %45 : vector<1x16xf32> to vector<16x16xf32>
    %48 = arith.addf %46, %47 : vector<16x16xf32>
    %cst_17 = arith.constant 0.000000e+00 : f32
    %49 = vector.broadcast %cst_17 : f32 to vector<16x16xf32>
    %50 = arith.cmpf ogt, %48, %49 : vector<16x16xf32>
    %cst_18 = arith.constant 2.000000e-01 : f32
    %51 = vector.broadcast %cst_18 : f32 to vector<16x16xf32>
    %52 = arith.mulf %51, %48 : vector<16x16xf32>
    %53 = arith.select %50, %48, %52 : vector<16x16xi1>, vector<16x16xf32>
    %cst_19 = arith.constant -9.000000e+15 : f32
    %54 = vector.broadcast %cst_19 : f32 to vector<16x16xf32>
    %55 = arith.select %7, %53, %54 : vector<16x16xi1>, vector<16x16xf32>
    %cst_20 = arith.constant dense<0xFF800000> : vector<16xf32>
    %56 = vector.multi_reduction <maximumf>, %55, %cst_20 [1] : vector<16x16xf32> to vector<16xf32>
    %57 = vector.shape_cast %56 : vector<16xf32> to vector<16x1xf32>
    %58 = vector.broadcast %57 : vector<16x1xf32> to vector<16x16xf32>
    %59 = arith.subf %55, %58 : vector<16x16xf32>
    %60 = math.exp %59 : vector<16x16xf32>
    %61 = tpu.concatenate %43, %12 in 1 : vector<16x8xf32>, vector<16x1xf32> -> vector<16x9xf32>
    %62 = arith.truncf %61 : vector<16x9xf32> to vector<16x9xbf16>
    %63 = arith.truncf %60 : vector<16x16xf32> to vector<16x16xbf16>
    %cst_21 = arith.constant dense<0.000000e+00> : vector<16x9xf32>
    %64 = tpu.matmul %63, %62, %cst_21 {dimension_numbers = #tpu.dot_dimension_numbers<[1], [0], [0], [1], [0, 0, 1, 1], [], []>} : vector<16x16xbf16>, vector<16x9xbf16>, vector<16x9xf32> -> vector<16x9xf32>
    %65 = vector.extract_strided_slice %64 {offsets = [0, 0], sizes = [16, 8], strides = [1, 1]} : vector<16x9xf32> to vector<16x8xf32>
    %66 = vector.extract_strided_slice %64 {offsets = [0, 8], sizes = [16, 1], strides = [1, 1]} : vector<16x9xf32> to vector<16x1xf32>
    %67 = tpu.reciprocal %66 : vector<16x1xf32> -> vector<16x1xf32>
    %68 = vector.broadcast %67 : vector<16x1xf32> to vector<16x8xf32>
    %69 = arith.mulf %65, %68 : vector<16x8xf32>
    %c0_22 = arith.constant 0 : index
    %c0_23 = arith.constant 0 : index
    %c8 = arith.constant 8 : index
    %70 = vector.load %arg4[%c0_22, %c0_23, %c8] : memref<1x16x32xf32, #tpu.memory_space<vmem>>, vector<1x16x8xf32>
    %71 = vector.shape_cast %70 : vector<1x16x8xf32> to vector<16x8xf32>
    %72 = vector.shape_cast %69 : vector<16x8xf32> to vector<1x16x8xf32>
    tpu.vector_store %arg4[%c0_22, %c0_23, %c8], %72 {strides = array<i32>} : memref<1x16x32xf32, #tpu.memory_space<vmem>>, vector<1x16x8xf32>,
    %73 = vector.extract_strided_slice %8 {offsets = [0, 16], sizes = [16, 8], strides = [1, 1]} : vector<16x40xf32> to vector<16x8xf32>
    %74 = vector.extract_strided_slice %9 {offsets = [0, 2], sizes = [16, 1], strides = [1, 1]} : vector<16x4xf32> to vector<16x1xf32>
    %75 = vector.extract_strided_slice %11 {offsets = [2, 0], sizes = [1, 16], strides = [1, 1]} : vector<4x16xf32> to vector<1x16xf32>
    %76 = vector.broadcast %74 : vector<16x1xf32> to vector<16x16xf32>
    %77 = vector.broadcast %75 : vector<1x16xf32> to vector<16x16xf32>
    %78 = arith.addf %76, %77 : vector<16x16xf32>
    %cst_24 = arith.constant 0.000000e+00 : f32
    %79 = vector.broadcast %cst_24 : f32 to vector<16x16xf32>
    %80 = arith.cmpf ogt, %78, %79 : vector<16x16xf32>
    %cst_25 = arith.constant 2.000000e-01 : f32
    %81 = vector.broadcast %cst_25 : f32 to vector<16x16xf32>
    %82 = arith.mulf %81, %78 : vector<16x16xf32>
    %83 = arith.select %80, %78, %82 : vector<16x16xi1>, vector<16x16xf32>
    %cst_26 = arith.constant -9.000000e+15 : f32
    %84 = vector.broadcast %cst_26 : f32 to vector<16x16xf32>
    %85 = arith.select %7, %83, %84 : vector<16x16xi1>, vector<16x16xf32>
    %cst_27 = arith.constant dense<0xFF800000> : vector<16xf32>
    %86 = vector.multi_reduction <maximumf>, %85, %cst_27 [1] : vector<16x16xf32> to vector<16xf32>
    %87 = vector.shape_cast %86 : vector<16xf32> to vector<16x1xf32>
    %88 = vector.broadcast %87 : vector<16x1xf32> to vector<16x16xf32>
    %89 = arith.subf %85, %88 : vector<16x16xf32>
    %90 = math.exp %89 : vector<16x16xf32>
    %91 = tpu.concatenate %73, %12 in 1 : vector<16x8xf32>, vector<16x1xf32> -> vector<16x9xf32>
    %92 = arith.truncf %91 : vector<16x9xf32> to vector<16x9xbf16>
    %93 = arith.truncf %90 : vector<16x16xf32> to vector<16x16xbf16>
    %cst_28 = arith.constant dense<0.000000e+00> : vector<16x9xf32>
    %94 = tpu.matmul %93, %92, %cst_28 {dimension_numbers = #tpu.dot_dimension_numbers<[1], [0], [0], [1], [0, 0, 1, 1], [], []>} : vector<16x16xbf16>, vector<16x9xbf16>, vector<16x9xf32> -> vector<16x9xf32>
    %95 = vector.extract_strided_slice %94 {offsets = [0, 0], sizes = [16, 8], strides = [1, 1]} : vector<16x9xf32> to vector<16x8xf32>
    %96 = vector.extract_strided_slice %94 {offsets = [0, 8], sizes = [16, 1], strides = [1, 1]} : vector<16x9xf32> to vector<16x1xf32>
    %97 = tpu.reciprocal %96 : vector<16x1xf32> -> vector<16x1xf32>
    %98 = vector.broadcast %97 : vector<16x1xf32> to vector<16x8xf32>
    %99 = arith.mulf %95, %98 : vector<16x8xf32>
    %c0_29 = arith.constant 0 : index
    %c0_30 = arith.constant 0 : index
    %c16 = arith.constant 16 : index
    %100 = vector.load %arg4[%c0_29, %c0_30, %c16] : memref<1x16x32xf32, #tpu.memory_space<vmem>>, vector<1x16x8xf32>
    %101 = vector.shape_cast %100 : vector<1x16x8xf32> to vector<16x8xf32>
    %102 = vector.shape_cast %99 : vector<16x8xf32> to vector<1x16x8xf32>
    tpu.vector_store %arg4[%c0_29, %c0_30, %c16], %102 {strides = array<i32>} : memref<1x16x32xf32, #tpu.memory_space<vmem>>, vector<1x16x8xf32>,
    %103 = vector.extract_strided_slice %8 {offsets = [0, 24], sizes = [16, 8], strides = [1, 1]} : vector<16x40xf32> to vector<16x8xf32>
    %104 = vector.extract_strided_slice %9 {offsets = [0, 3], sizes = [16, 1], strides = [1, 1]} : vector<16x4xf32> to vector<16x1xf32>
    %105 = vector.extract_strided_slice %11 {offsets = [3, 0], sizes = [1, 16], strides = [1, 1]} : vector<4x16xf32> to vector<1x16xf32>
    %106 = vector.broadcast %104 : vector<16x1xf32> to vector<16x16xf32>
    %107 = vector.broadcast %105 : vector<1x16xf32> to vector<16x16xf32>
    %108 = arith.addf %106, %107 : vector<16x16xf32>
    %cst_31 = arith.constant 0.000000e+00 : f32
    %109 = vector.broadcast %cst_31 : f32 to vector<16x16xf32>
    %110 = arith.cmpf ogt, %108, %109 : vector<16x16xf32>
    %cst_32 = arith.constant 2.000000e-01 : f32
    %111 = vector.broadcast %cst_32 : f32 to vector<16x16xf32>
    %112 = arith.mulf %111, %108 : vector<16x16xf32>
    %113 = arith.select %110, %108, %112 : vector<16x16xi1>, vector<16x16xf32>
    %cst_33 = arith.constant -9.000000e+15 : f32
    %114 = vector.broadcast %cst_33 : f32 to vector<16x16xf32>
    %115 = arith.select %7, %113, %114 : vector<16x16xi1>, vector<16x16xf32>
    %cst_34 = arith.constant dense<0xFF800000> : vector<16xf32>
    %116 = vector.multi_reduction <maximumf>, %115, %cst_34 [1] : vector<16x16xf32> to vector<16xf32>
    %117 = vector.shape_cast %116 : vector<16xf32> to vector<16x1xf32>
    %118 = vector.broadcast %117 : vector<16x1xf32> to vector<16x16xf32>
    %119 = arith.subf %115, %118 : vector<16x16xf32>
    %120 = math.exp %119 : vector<16x16xf32>
    %121 = tpu.concatenate %103, %12 in 1 : vector<16x8xf32>, vector<16x1xf32> -> vector<16x9xf32>
    %122 = arith.truncf %121 : vector<16x9xf32> to vector<16x9xbf16>
    %123 = arith.truncf %120 : vector<16x16xf32> to vector<16x16xbf16>
    %cst_35 = arith.constant dense<0.000000e+00> : vector<16x9xf32>
    %124 = tpu.matmul %123, %122, %cst_35 {dimension_numbers = #tpu.dot_dimension_numbers<[1], [0], [0], [1], [0, 0, 1, 1], [], []>} : vector<16x16xbf16>, vector<16x9xbf16>, vector<16x9xf32> -> vector<16x9xf32>
    %125 = vector.extract_strided_slice %124 {offsets = [0, 0], sizes = [16, 8], strides = [1, 1]} : vector<16x9xf32> to vector<16x8xf32>
    %126 = vector.extract_strided_slice %124 {offsets = [0, 8], sizes = [16, 1], strides = [1, 1]} : vector<16x9xf32> to vector<16x1xf32>
    %127 = tpu.reciprocal %126 : vector<16x1xf32> -> vector<16x1xf32>
    %128 = vector.broadcast %127 : vector<16x1xf32> to vector<16x8xf32>
    %129 = arith.mulf %125, %128 : vector<16x8xf32>
    %c0_36 = arith.constant 0 : index
    %c0_37 = arith.constant 0 : index
    %c24 = arith.constant 24 : index
    %130 = vector.load %arg4[%c0_36, %c0_37, %c24] : memref<1x16x32xf32, #tpu.memory_space<vmem>>, vector<1x16x8xf32>
    %131 = vector.shape_cast %130 : vector<1x16x8xf32> to vector<16x8xf32>
    %132 = vector.shape_cast %129 : vector<16x8xf32> to vector<1x16x8xf32>
    tpu.vector_store %arg4[%c0_36, %c0_37, %c24], %132 {strides = array<i32>} : memref<1x16x32xf32, #tpu.memory_space<vmem>>, vector<1x16x8xf32>,
    return
  }
  func.func @transform_0(%arg0: i32) -> (i32, i32, i32) {
    %c0_i32 = arith.constant 0 : i32
    %c0_i32_0 = arith.constant 0 : i32
    %c0_i32_1 = arith.constant 0 : i32
    return %arg0, %c0_i32, %c0_i32_0 : i32, i32, i32
  }
  func.func @transform_1(%arg0: i32) -> (i32, i32, i32) {
    %c0_i32 = arith.constant 0 : i32
    %c0_i32_0 = arith.constant 0 : i32
    %c0_i32_1 = arith.constant 0 : i32
    return %arg0, %c0_i32, %c0_i32_0 : i32, i32, i32
  }
  func.func @transform_2(%arg0: i32) -> (i32, i32) {
    %c0_i32 = arith.constant 0 : i32
    %c0_i32_0 = arith.constant 0 : i32
    %c0_i32_1 = arith.constant 0 : i32
    return %c0_i32, %c0_i32_0 : i32, i32
  }
  func.func @transform_3(%arg0: i32) -> (i32, i32, i32) {
    %c0_i32 = arith.constant 0 : i32
    %c0_i32_0 = arith.constant 0 : i32
    %c0_i32_1 = arith.constant 0 : i32
    return %arg0, %c0_i32, %c0_i32_0 : i32, i32, i32
  }
}

</mosaic_0001>

<bundles_post_ra>
// kernel: tpu_custom_call.1
= control target key start
LH: loop header
LB: loop body
LE: loop exit
PB: predicated region body
PF: predicated region fallthrough
CT: control target
= control target key end

     0   :  { %s1712_s0 = inlined_call_operand.hbm [shape: f32[4,16,16], index: 0, kind: input, shape index: {}]   ;;  %s1713_s1 = inlined_call_operand.hbm [shape: s8[4,16,16], index: 1, kind: input, shape index: {}]   ;;  %s1714_s2 = inlined_call_operand.hbm [shape: f32[16,40], index: 2, kind: input, shape index: {}]   ;;  %s1715_s3 = inlined_call_operand.hbm [shape: f32[4,16,32], index: 3, kind: output, shape index: {}]  }
   0x1   :  { %1719 = sst [smem:[#allocation13_spill]] %s1712_s0 }
   0x2   :  { %8 = vsyncpa [#allocation3], 0 }
   0x3   :  { %10 = vsyncpa [#allocation3 + $0x1], 0 }
   0x4   :  { %11 = vsyncpa [#allocation6], 0 }
   0x5   :  { %13 = vsyncpa [#allocation6 + $0x1], 0 }
   0x6   :  { %14 = vsyncpa [#allocation4], 0 }
   0x7   :  { %16 = vsyncpa [#allocation4 + $0x1], 0  ;;  %s1360_s12 = smov 0   ;;  %s1362_s13 = smov 0  }
   0x8   :  { %s1364_s14 = smov 0   ;;  %s1366_s15 = smov 0  }
   0x9 LB: > { %s1381_s16 = sadd.s32 4294967295, %s1315_s15   ;;  %s935_s17 = sadd.s32 4294967294, %s1315_s15   ;;  %s1315_s15 = sphi %s1366_s15, %s1736_s15   ;;  %s1311_s14 = sphi %s1364_s14, %s1735_s14   ;;  %s1307_s13 = sphi %s1362_s13, %s1734_s13   ;;  %s1303_s12 = sphi %s1360_s12, %s1733_s12  }
   0xa   : > { %p42_p0 = scmp.ne.s32.totalorder %s1307_s13, %s1303_s12  ;;  %p1716_p1 = scmp.eq.s32.totalorder %s1381_s16, 0 }
   0xb   : > { %p119_p3 = scmp.eq.s32.totalorder %s935_s17, 3  ;;  %p936_p5 = scmp.ge.s32.totalorder %s1315_s15, 1 }
   0xc   : > { %p1390_p4 = por %p1716_p1, %p42_p0  ;;  %p126_p7 = scmp.lt.s32.totalorder %s1315_s15, 5 }
   0xd   : > { %p1395_p6 = por %p119_p3, %p42_p0  ;;  %s1317_s21 = smov [#allocation7]  }
   0xe   : > { %s1720_s18 = scalar_select %p1390_p4, 1, 0 }
   0xf   : > { %s1721_s19 = scalar_select %p1395_p6, 1, 0 }
  0x10   : > { %p1400_p8 = pnand %p936_p5, %p126_p7  ;;  %s138_s22 = sshll.u32 %s1317_s21, 4  ;;  %s139_s22 = int_to_ptr.vmem [resolvable:$true] %s138_s22 }
  0x11   : > { %s1413_s24 = sadd.s32 1, %s1315_s15   ;;  %s29_s25 = sadd.s32 1, %s1311_s14 }
  0x12   : > { %s1722_s20 = scalar_select %p1400_p8, 1, 0 }
  0x13   : > { %p1025_p9 = pneg %p1400_p8  ;;  %s26_s26 = ssub.s32 %s1315_s15, %s1413_s24 }
  0x14   : > { %s1153_s29 = scalar_lea.hbm %s1714_s2, 256 }
  0x15   : > { %p1408_p10 = pnand %p1025_p9, %p1716_p1  ;;  %p1154_p11 = scmp.ne.s32.totalorder %s1714_s2, %s1153_s29 }
  0x16   : > { %p1160_p3 = scmp.lt.u32.totalorder %s1153_s29, %s1714_s2 }
  0x17   : > { %p1155_p12 = pneg %p1408_p10 }
  0x19   : > { %p1156_p13 = pnand %p1155_p12, %p1154_p11 }
  0x1b   : > { %p1157_p0 = pneg %p1156_p13 }
  0x1d   : > { %p1162_p5 = pnand %p1160_p3, %p1157_p0 }
  0x1f   : > { %1165 = shalt.err (!%p1162_p5)
}
  0x20   : > { %s1166_s7 = scalar_lea.vmem %s139_s22, 256  ;;  %p1174_p2 = scmp.lt.s32.totalorder %s139_s22, %s139_s22 }
  0x21   : > { %p1167_p7 = scmp.ne.s32.totalorder %s139_s22, %s1166_s7  ;;  %p1175_p6 = scmp.lt.s32.totalorder %s1166_s7, %s1166_s7 }
  0x23   : > { %p1169_p9 = pnand %p1167_p7, %p1155_p12  ;;  %p1176_p4 = por %p1175_p6, %p1174_p2 }
  0x25   : > { %p1170_p1 = pneg %p1169_p9 }
  0x27   : > { %p1177_p8 = pnand %p1176_p4, %p1170_p1 }
  0x29   : > { %1180 = shalt.err (!%p1177_p8)
}
  0x2a   : > { %s1318_s8 = smov 128   ;;  %s1319_s9 = smov 8  }
  0x2b   : > { %1028 = dma.hbm_to_vmem [thread:$0]  (!%p1408_p10), %s1714_s2, 256, %s139_s22, [#allocation6], %s1318_s8, %s1318_s8, %s1319_s9  }
  0x2c   : > { %p27_p1 = scmp.eq.s32.totalorder %s26_s26, 0  ;;  %p36_p2 = scmp.ne.s32.totalorder %s1311_s14, %s1307_s13 }
  0x2d   : > { %p37_p4 = scmp.eq.s32.totalorder %s1315_s15, 0  ;;  %p1041_p6 = scmp.lt.s32.totalorder %s1315_s15, 4 }
  0x2e   : > { %s1442_s17 = scalar_select %p27_p1, %s1311_s14, %s29_s25  }
  0x2f   : > { %p38_p8 = por %p37_p4, %p36_p2  ;;  %p1724_p11 = scmp.eq.s32.totalorder %s1381_s16, 3 }
  0x30   : > { %s1451_s23 = sand.u32 1, %s1311_s14   ;;  %s961_s27 = sshll.u32 %s1315_s15, 8 }
  0x31   : > { %p1446_p12 = por %p1724_p11, %p36_p2  ;;  %s939_s28 = sshll.u32 %s1451_s23, 4 }
  0x32   : > { %s1726_s0 = sld [smem:[#allocation13_spill]]  ;;  %s156_s25 = scalar_lea.vmem [#allocation2], %s939_s28 }
  0x33   : > { %s163_s30 = sshll.u32 %s156_s25, 4  ;;  %p1460_p10 = pnand %p1041_p6, %p38_p8  ;;  %s1464_s30 = int_to_ptr.vmem [resolvable:$true] %s163_s30 }
  0x34   : > { %s173_s5 = sand.u32 1, %s1315_s15   ;;  %s153_s6 = scalar_lea.sflag [#allocation3], %s1451_s23 }
  0x35   : > { %p1183_p0 = pneg %p1460_p10 }
  0x38   : > { %s1458_s26 = scalar_lea.hbm %s1726_s0, %s961_s27  ;;  %s1186_s27 = scalar_lea.hbm %s1726_s0, 1024 }
  0x39   : > { %s1181_s7 = scalar_lea.hbm %s1458_s26, 256  ;;  %p1187_p7 = scmp.lt.u32.totalorder %s1458_s26, %s1726_s0 }
  0x3a   : > { %p1182_p13 = scmp.ne.s32.totalorder %s1458_s26, %s1181_s7  ;;  %p1188_p9 = scmp.lt.u32.totalorder %s1186_s27, %s1181_s7 }
  0x3b   : > { %p1190_p2 = scmp.lt.u32.totalorder %s1181_s7, %s1458_s26 }
  0x3c   : > { %p1184_p3 = pnand %p1183_p0, %p1182_p13  ;;  %p1189_p1 = por %p1188_p9, %p1187_p7 }
  0x3e   : > { %p1185_p5 = pneg %p1184_p3  ;;  %p1191_p4 = por %p1190_p2, %p1189_p1 }
  0x40   : > { %p1192_p6 = pnand %p1191_p4, %p1185_p5 }
  0x42   : > { %1195 = shalt.err (!%p1192_p6)
}
  0x43   : > { %s1196_s29 = scalar_lea.vmem %s1464_s30, 256  ;;  %s1320_s25 = smov [#allocation2]  }
  0x44   : > { %p1197_p8 = scmp.ne.s32.totalorder %s1464_s30, %s1196_s29  ;;  %s1201_s10 = sshll.u32 %s1320_s25, 4  ;;  %s1202_s10 = int_to_ptr.vmem [resolvable:$false] %s1201_s10 }
  0x45   : > { %s1203_s11 = scalar_lea.vmem %s1202_s10, 512  ;;  %p1204_p3 = scmp.lt.s32.totalorder %s1464_s30, %s1202_s10 }
  0x46   : > { %p1199_p11 = pnand %p1197_p8, %p1183_p0  ;;  %p1205_p7 = scmp.lt.s32.totalorder %s1203_s11, %s1196_s29 }
  0x48   : > { %p1200_p13 = pneg %p1199_p11  ;;  %p1206_p9 = por %p1205_p7, %p1204_p3 }
  0x4a   : > { %p1207_p1 = pnand %p1206_p9, %p1200_p13 }
  0x4c   : > { %1210 = shalt.err (!%p1207_p1)
}
  0x4d   : > { %1032 = dma.hbm_to_vmem [thread:$0]  (!%p1460_p10), %s1458_s26, 256, %s1464_s30, %s153_s6, %s1318_s8, %s1318_s8, %s1319_s9  }
  0x4e   : > { %s942_s7 = sshll.u32 %s1451_s23, 2  ;;  %s962_s27 = sshll.u32 %s1315_s15, 6 }
  0x4f   : > { %s1503_s29 = scalar_lea.hbm %s1713_s1, %s962_s27  ;;  %s177_s25 = scalar_lea.vmem [#allocation5], %s942_s7 }
  0x50   : > { %s184_s10 = sshll.u32 %s177_s25, 4  ;;  %s1509_s11 = scalar_lea.sflag [#allocation6], %s173_s5  ;;  %s1505_s10 = int_to_ptr.vmem [resolvable:$true] %s184_s10 }
  0x51   : > { %s1211_s0 = scalar_lea.hbm %s1503_s29, 64  ;;  %s1216_s23 = scalar_lea.hbm %s1713_s1, 256 }
  0x52   : > { %p1212_p5 = scmp.ne.s32.totalorder %s1503_s29, %s1211_s0  ;;  %p1217_p6 = scmp.lt.u32.totalorder %s1503_s29, %s1713_s1 }
  0x53   : > { %p1218_p8 = scmp.lt.u32.totalorder %s1216_s23, %s1211_s0  ;;  %p1220_p13 = scmp.lt.u32.totalorder %s1211_s0, %s1503_s29 }
  0x54   : > { %p1214_p2 = pnand %p1212_p5, %p1183_p0 }
  0x55   : > { %p1219_p11 = por %p1218_p8, %p1217_p6 }
  0x56   : > { %p1215_p4 = pneg %p1214_p2 }
  0x57   : > { %p1221_p3 = por %p1220_p13, %p1219_p11 }
  0x59   : > { %p1222_p7 = pnand %p1221_p3, %p1215_p4 }
  0x5b   : > { %1225 = shalt.err (!%p1222_p7)
}
  0x5c   : > { %s1226_s5 = scalar_lea.vmem %s1505_s10, 64  ;;  %s1321_s6 = smov [#allocation5]  }
  0x5d   : > { %p1227_p9 = scmp.ne.s32.totalorder %s1505_s10, %s1226_s5  ;;  %s1231_s7 = sshll.u32 %s1321_s6, 4  ;;  %s1232_s7 = int_to_ptr.vmem [resolvable:$false] %s1231_s7 }
  0x5e   : > { %s1233_s27 = scalar_lea.vmem %s1232_s7, 128  ;;  %p1234_p2 = scmp.lt.s32.totalorder %s1505_s10, %s1232_s7 }
  0x5f   : > { %p1229_p1 = pnand %p1227_p9, %p1183_p0  ;;  %p1235_p6 = scmp.lt.s32.totalorder %s1233_s27, %s1226_s5 }
  0x61   : > { %p1230_p5 = pneg %p1229_p1  ;;  %p1236_p8 = por %p1235_p6, %p1234_p2 }
  0x63   : > { %p1237_p11 = pnand %p1236_p8, %p1230_p5 }
  0x65   : > { %1240 = shalt.err (!%p1237_p11)
}
  0x66   : > { %s1322_s0 = smov 32   ;;  %s1323_s28 = smov 2  }
  0x67   : > { %1035 = dma.hbm_to_vmem [thread:$0]  (!%p1460_p10), %s1503_s29, 64, %s1505_s10, %s1509_s11, %s1322_s0, %s1322_s0, %s1323_s28  }
  0x68   : > { %p1728_p0 = scmp.ne.s32.totalorder %s1722_s20, 0 }
  0x69   : > { %s1538_s22 = sand.u32 (!%p1728_p0), 1, %s1307_s13   ;;  %p1729_p4 = scmp.ne.s32.totalorder (!%p1728_p0), %s1720_s18, 0 }
  0x6a   : > { %196 = sbr.rel (%p1728_p0) target bundleno = 1311 (0x51f), region = 32  ;;  %s946_s25 = sshll.u32 (!%p1728_p0), %s1538_s22, 4 }
  0x6b   : > { %s199_s8 = scalar_lea.sflag (!%p1728_p0), [#allocation3], %s1538_s22  ;;  %s202_s9 = scalar_lea.vmem (!%p1728_p0), [#allocation2], %s946_s25 }
  0x71   : > { %1286 = dma.done.wait (%p1729_p4), %s199_s8, 256  }
  0x72   : > { %1288 = vsyncadd (%p1729_p4), %s199_s8, 4294967040  ;;  %s207_s20 = sand.u32 1, %s1381_s16   ;;  %s947_s4 = sshll.u32 %s1538_s22, 2 }
  0x73   : > { %s208_s29 = scalar_lea.sflag [#allocation6], %s207_s20  ;;  %s1550_s10 = scalar_lea.vmem [#allocation5], %s947_s4 }
  0x74   : > { %1290 = dma.done.wait (%p1729_p4), %s208_s29, 64  }
  0x75   : > { %1292 = vsyncadd (%p1729_p4), %s208_s29, 4294967232  ;;  %p1730_p10 = scmp.eq.s32.totalorder %s1381_s16, 0 }
  0x77   : > { %1294 = dma.done.wait (%p1730_p10), [#allocation6], 256   ;;  %p1731_p13 = pmov %p1730_p10 }
  0x78   : > { %v1324_v0 = vmov 32   ;;  %vm256_vm0 = vcmask 130048   ;;  %v246_v1 = vld [vmem:[#allocation7] sm:$0xff]  ;;  %v247_v2 = vld [vmem:[#allocation7 + $0x8] sm:$0xff]  ;;  %v1325_v6 = vmov 0.0   ;;  %v1326_v7 = vmov 34  }
  0x79   : > { %1296 = vsyncadd (%p1731_p13), [#allocation6], 4294967040  ;;  %1096 = vset.pattern.permute.xlu1 %v1324_v0  ;;  %v244_v3 = vld [vmem:[%s202_s9] sm:$0xff]  ;;  %v1011_v4 = vpack.c.bf16 %v247_v2, %v246_v1  ;;  %v245_v5 = vld [vmem:[%s202_s9 + $0x8] sm:$0xff]  ;;  %987 = vmatprep.subr.bf16.mxu1 %v1325_v6  ;;  %vm412_vm1 = vcmask 64512   ;;  %s1327_s18 = smov 92   ;;  %v386_v21 = vlaneseq }
  0x7a   : > { %984 = vmatprep.mubr.msk.f32.mxu0 %vm256_vm0, %v244_v3  ;;  %1098 = vset.pattern.permute.xlu0 %v1326_v7  ;;  %v1328_v14 = vmov 33   ;;  %v1329_v15 = vmov 35   ;;  %v965_v24 = vld [vmem:[%s1550_s10] sm:$0xf]   ;;  %s1330_s11 = smov 120   ;;  %s1331_s23 = smov 104  }
  0x7b   : > { %1012 = vmatprep.subr.bf16.mxu0 %v1011_v4  ;;  %v387_v23 = vshrl.u32 %v386_v21, 7  ;;  %v967_v27 = vunpack.c.1.s8 %v965_v24  ;;  %v966_v28 = vunpack.c.0.s8 %v965_v24  ;;  %vm1332_vm8 = vmmov 0   ;;  %s1333_s26 = smov 112   ;;  %s1646_s30 = scalar_lea.vmem [#allocation8], %s946_s25 }
  0x7c   : > { %1014 = vmatpush3.bf16.msra.mxu0 %v1011_v4  ;;  %989 = vmatprep.mubr.msk.bf16.mxu1 %vm1332_vm8, %v1325_v6  ;;  %s1335_s5 = smov 8   ;;  %s1336_s6 = smov 16   ;;  %vm587_vm13 = vcmask 130112   ;;  %vm700_vm14 = vcmask 195712   ;;  %vm813_vm15 = vcmask 261312  }
  0x7d   : > { %993 = vmatprep.subr.bf16.mxu0 %v1325_v6  ;;  %v388_v29 = vsub.s32 0, %v387_v23  ;;  %v713_v30 = vsub.s32 3, %v387_v23  ;;  %v1572_v33 = vcvt.s32.f32 %v967_v27  ;;  %v1574_v34 = vcvt.s32.f32 %v966_v28  ;;  %s1337_s7 = smov 24   ;;  %s963_s27 = sshll.u32 %s1381_s16, 8 }
  0x7e   : > { %v487_v56 = vsub.s32 1, %v387_v23  ;;  %v600_v58 = vsub.s32 2, %v387_v23  ;;  %s830_s0 = sshll.u32 %s1646_s30, 4  ;;  %s1665_s8 = scalar_lea.hbm %s1715_s3, %s963_s27  ;;  %s1667_s0 = int_to_ptr.vmem [resolvable:$true] %s830_s0 }
  0x7f   : > { %985 = vmatmul.mubr.msk.f32.vlgmr.msra.gmra.mrb[0].mxu0 %vm256_vm0, %v245_v5  ;;  %vm255_vm2 = vcmp.gt.f32.partialorder %v1572_v33, 0.0  ;;  %vm254_vm3 = vcmp.gt.f32.partialorder %v1574_v34, 0.0  ;;  %s817_s9 = scalar_lea.sflag [#allocation4], %s1538_s22  ;;  %s1241_s20 = scalar_lea.vmem %s1667_s0, 256 }
  0x80   : > { %995 = vmatprep.mubr.msk.bf16.mxu0 %vm1332_vm8, %v1325_v6  ;;  %p1242_p3 = scmp.ne.s32.totalorder %s1667_s0, %s1241_s20  ;;  %s1338_s16 = smov [#allocation8]  }
  0x81   : > { %s1245_s4 = sshll.u32 %s1338_s16, 4  ;;  %s1246_s4 = int_to_ptr.vmem [resolvable:$false] %s1245_s4 }
  0x82   : > { %p1243_p7 = pnand %p1242_p3, %p1446_p12  ;;  %s1247_s29 = scalar_lea.vmem %s1246_s4, 512 }
  0x83   : > { %p1248_p1 = scmp.lt.s32.totalorder %s1667_s0, %s1246_s4  ;;  %p1249_p5 = scmp.lt.s32.totalorder %s1247_s29, %s1241_s20 }
  0x84   : > { %p1244_p9 = pneg %p1243_p7 }
  0x85   : > { %p1250_p2 = por %p1249_p5, %p1248_p1 }
  0x87   : > { %p1251_p6 = pnand %p1250_p2, %p1244_p9 }
 0x152   : > { %v986_v8 = vpop.f32.mrb[0].mxu0 }
 0x153   : > { %383 = vperm.xlu1 %1096, %v986_v8   ;;  %v329_v9 = vpop.f32.mrb[1].mxu0  ;;  %v414_v10 = vsel %vm412_vm1, %v986_v8, 1.0 }
 0x154   : > { %340 = vrot.lane.b32.xlu0 %v329_v9, %s1327_s18  ;;  %v413_v11 = vsel %vm412_vm1, %v329_v9, 1.0  ;;  %v1566_v12 = vpack.i.bf16 %v986_v8, %v329_v9 }
 0x155   : > { %v415_v13 = vpack.c.bf16 %v414_v10, %v413_v11 }
 0x157   : > { %1097 = vset.pattern.permute.xlu1 %v1328_v14  ;;  %988 = vmatpush3.bf16.msra.mxu1 %v415_v13 }
 0x158   : > { %482 = vperm.xlu1 %1097, %v986_v8   ;;  %342 = vrot.lane.b32.xlu0 %v986_v8, %s1327_s18 }
 0x159   : > { %999 = vmatprep.subr.bf16.mxu1 %v1325_v6 }
 0x15c   : > { %1099 = vset.pattern.permute.xlu1 %v1329_v15  ;;  %595 = vperm.xlu0 %1098, %v986_v8  }
 0x15d   : > { %708 = vperm.xlu1 %1099, %v986_v8  }
 0x160   : > { %1101 = vset.pattern.permute.xlu0 %v1328_v14 }
 0x161   : > { %1100 = vset.pattern.permute.xlu1 %v1324_v0  ;;  %478 = vperm.xlu0 %1101, %v329_v9  }
 0x162   : > { %379 = vperm.xlu1 %1100, %v329_v9  }
 0x166   : > { %1102 = vset.pattern.permute.xlu1 %v1326_v7 }
 0x167   : > { %591 = vperm.xlu1 %1102, %v329_v9  }
 0x16b   : > { %1103 = vset.pattern.permute.xlu1 %v1329_v15 }
 0x16c   : > { %704 = vperm.xlu1 %1103, %v329_v9  }
 0x1c6   : > { %v341_v16 = vpop.permute.xlu0 %340 }
 0x1c7   : > { %346 = vxpose.xlu0.b32.start [1/2] (short) (narrow) %v341_v16, 8 }
 0x1ca   : > { %v343_v17 = vpop.permute.xlu0 %342 }
 0x1cb   : > { %347 = vxpose.xlu0.b32.end [2/2] (short) (narrow) %v343_v17, 8 }
 0x1d2   : > { %v384_v18 = vpop.permute.xlu1 %383 }
 0x1d7   : > { %v483_v19 = vpop.permute.xlu1 %482 }
 0x1db   : > { %v1569_v22 = vpop.permute.xlu0 %595 }
 0x1dc   : > { %v709_v20 = vpop.permute.xlu1 %708 }
 0x1e0   : > { %v479_v26 = vpop.permute.xlu0 %478 }
 0x1e1   : > { %v380_v25 = vpop.permute.xlu1 %379 }
 0x1e6   : > { %v592_v31 = vpop.permute.xlu1 %591 }
 0x1eb   : > { %v705_v41 = vpop.permute.xlu1 %704 }
 0x247   : > { %v362_v32 = vpop.trf.xlu0 }
 0x248   : > { %v389_v35 = vrot.slane %v362_v32, %v388_v29  ;;  %v714_v36 = vrot.slane %v362_v32, %v713_v30  ;;  %v488_v57 = vrot.slane %v362_v32, %v487_v56  ;;  %v601_v60 = vrot.slane %v362_v32, %v600_v58 }
 0x24a   : > { %v391_v37 = vadd.f32 %v389_v35, %v384_v18  ;;  %v390_v38 = vadd.f32 %v389_v35, %v380_v25  ;;  %v715_v44 = vadd.f32 %v714_v36, %v705_v41  ;;  %v716_v45 = vadd.f32 %v714_v36, %v709_v20 }
 0x24b   : > { %v489_v59 = vadd.f32 %v488_v57, %v479_v26  ;;  %v490_v62 = vadd.f32 %v488_v57, %v483_v19  ;;  %v602_v1 = vadd.f32 %v601_v60, %v592_v31  ;;  %v603_v5 = vadd.f32 %v601_v60, %v1569_v22 }
 0x24c   : > { %vm393_vm4 = vcmp.gt.f32.partialorder %v391_v37, 0.0  ;;  %v395_v39 = vmul.f32 0.2, %v391_v37  ;;  %vm392_vm5 = vcmp.gt.f32.partialorder %v390_v38, 0.0  ;;  %v394_v40 = vmul.f32 0.2, %v390_v38 }
 0x24d   : > { %vm717_vm6 = vcmp.gt.f32.partialorder %v715_v44, 0.0  ;;  %vm718_vm7 = vcmp.gt.f32.partialorder %v716_v45, 0.0  ;;  %v719_v50 = vmul.f32 0.2, %v715_v44  ;;  %v720_v51 = vmul.f32 0.2, %v716_v45 }
 0x24e   : > { %v397_v42 = vsel %vm393_vm4, %v391_v37, %v395_v39  ;;  %v396_v43 = vsel %vm392_vm5, %v390_v38, %v394_v40  ;;  %v493_v61 = vmul.f32 0.2, %v489_v59  ;;  %vm491_vm9 = vcmp.gt.f32.partialorder %v489_v59, 0.0 }
 0x24f   : > { %v1580_v46 = vsel %vm255_vm2, %v397_v42, -9e+15  ;;  %v1584_v47 = vsel %vm254_vm3, %v396_v43, -9e+15  ;;  %v721_v52 = vsel %vm717_vm6, %v715_v44, %v719_v50  ;;  %v722_v53 = vsel %vm718_vm7, %v716_v45, %v720_v51 }
 0x250   : > { %v403_v48 = vsel %vm256_vm0, %v1580_v46, -inf  ;;  %v400_v49 = vsel %vm256_vm0, %v1584_v47, -inf  ;;  %v1592_v54 = vsel %vm254_vm3, %v721_v52, -9e+15  ;;  %v1596_v55 = vsel %vm255_vm2, %v722_v53, -9e+15 }
 0x251   : > { %404 = vmax.xlane.f32.xlu0 %v403_v48  ;;  %401 = vmax.xlane.f32.xlu1 %v400_v49  ;;  %v495_v63 = vsel %vm491_vm9, %v489_v59, %v493_v61  ;;  %v494_v0 = vmul.f32 0.2, %v490_v62  ;;  %vm492_vm10 = vcmp.gt.f32.partialorder %v490_v62, 0.0  ;;  %v606_v4 = vmul.f32 0.2, %v602_v1 }
 0x252   : > { %v497_v2 = vsel %vm254_vm3, %v495_v63, -9e+15  ;;  %vm604_vm11 = vcmp.gt.f32.partialorder %v602_v1, 0.0  ;;  %v607_v10 = vmul.f32 0.2, %v603_v5  ;;  %vm605_vm12 = vcmp.gt.f32.partialorder %v603_v5, 0.0 }
 0x253   : > { %v496_v3 = vsel %vm492_vm10, %v490_v62, %v494_v0  ;;  %v499_v7 = vsel %vm256_vm0, %v497_v2, -inf  ;;  %v608_v9 = vsel %vm604_vm11, %v602_v1, %v606_v4  ;;  %v725_v18 = vsel %vm256_vm0, %v1592_v54, -inf }
 0x254   : > { %v498_v8 = vsel %vm255_vm2, %v496_v3, -9e+15  ;;  %v610_v13 = vsel %vm254_vm3, %v608_v9, -9e+15  ;;  %v609_v14 = vsel %vm605_vm12, %v603_v5, %v607_v10  ;;  %v728_v19 = vsel %vm256_vm0, %v1596_v55, -inf }
 0x255   : > { %v502_v11 = vsel %vm256_vm0, %v498_v8, -inf  ;;  %v612_v15 = vsel %vm256_vm0, %v610_v13, -inf  ;;  %v611_v16 = vsel %vm255_vm2, %v609_v14, -9e+15 }
 0x256   : > { %v615_v17 = vsel %vm256_vm0, %v611_v16, -inf }
 0x262   : > { %1105 = vrot.lane.b32.xlu1 %v1566_v12, %s1330_s11 }
 0x267   : > { %1115 = vrot.lane.b32.xlu0 %v1566_v12, %s1331_s23 }
 0x286   : > { %500 = vmax.xlane.f32.xlu1 %v499_v7 }
 0x28a   : > { %503 = vmax.xlane.f32.xlu1 %v502_v11 }
 0x28e   : > { %613 = vmax.xlane.f32.xlu1 %v612_v15 }
 0x292   : > { %616 = vmax.xlane.f32.xlu1 %v615_v17 }
 0x296   : > { %726 = vmax.xlane.f32.xlu1 %v725_v18 }
 0x29a   : > { %729 = vmax.xlane.f32.xlu1 %v728_v19 }
 0x2ab   : > { %1110 = vrot.lane.b32.xlu1 %v1566_v12, %s1333_s26 }
 0x2de   : > { %v405_v20 = vpop.xlane.xlu0 %404  ;;  %v402_v21 = vpop.xlane.xlu1 %401 }
 0x2df   : > { %v407_v22 = vsub.f32 %v1580_v46, %v405_v20  ;;  %v406_v23 = vsub.f32 %v1584_v47, %v402_v21 }
 0x2e1   : > { %v410_v24 = vmul.f32 1.442695, %v407_v22  ;;  %v408_v25 = vmul.f32 1.442695, %v406_v23 }
 0x2e2   : > { %v1106_v26 = vpop.permute.xlu1 %1105  ;;  %v1116_v41 = vpop.permute.xlu0 %1115 }
 0x2e3   : > { %1121 = vpow2.f32 %v410_v24  ;;  %v1108_v27 = vunpack.i.h.bf16 %v1106_v26  ;;  %v1107_v28 = vunpack.i.l.bf16 %v1106_v26  ;;  %v1118_v45 = vunpack.i.h.bf16 %v1116_v41 }
 0x2e4   : > { %1123 = vpow2.f32 %v408_v25  ;;  %v1117_v46 = vunpack.i.l.bf16 %v1116_v41 }
 0x2e5   : > { %v518_v29 = vsel %vm412_vm1, %v1108_v27, 1.0  ;;  %v517_v30 = vsel %vm412_vm1, %v1107_v28, 1.0  ;;  %v744_v52 = vsel %vm412_vm1, %v1118_v45, 1.0 }
 0x2e6   : > { %v519_v31 = vpack.c.bf16 %v518_v29, %v517_v30  ;;  %v743_v53 = vsel %vm412_vm1, %v1117_v46, 1.0 }
 0x2e7   : > { %v745_v60 = vpack.c.bf16 %v744_v52, %v743_v53 }
 0x2e8   : > { %994 = vmatpush3.bf16.msra.mxu0 %v519_v31 }
 0x2e9   : > { %1005 = vmatprep.subr.bf16.mxu0 %v1325_v6 }
 0x2ed   : > { %v1122_v12 = vpop.eup %1121 }
 0x2ee   : > { %v1124_v32 = vpop.eup %1123 }
 0x2ef   : > { %v416_v33 = vpack.c.bf16 %v1122_v12, %v1124_v32 }
 0x2f1   : > { %990 = vmatmul.mubr.msk.bf16.vlgmr.msra.gmra.mrb[0].mxu1 %vm256_vm0, %v416_v33 }
 0x2f2   : > { %1001 = vmatprep.mubr.msk.bf16.mxu1 %vm1332_vm8, %v1325_v6 }
 0x313   : > { %v501_v34 = vpop.xlane.xlu1 %500 }
 0x314   : > { %v505_v35 = vsub.f32 %v497_v2, %v501_v34 }
 0x316   : > { %v507_v36 = vmul.f32 1.442695, %v505_v35 }
 0x317   : > { %v504_v37 = vpop.xlane.xlu1 %503 }
 0x318   : > { %v506_v38 = vsub.f32 %v498_v8, %v504_v37  ;;  %1125 = vpow2.f32 %v507_v36 }
 0x31a   : > { %v509_v39 = vmul.f32 1.442695, %v506_v38 }
 0x31b   : > { %v614_v40 = vpop.xlane.xlu1 %613 }
 0x31c   : > { %1127 = vpow2.f32 %v509_v39  ;;  %v618_v42 = vsub.f32 %v610_v13, %v614_v40 }
 0x31e   : > { %v620_v48 = vmul.f32 1.442695, %v618_v42 }
 0x31f   : > { %v617_v43 = vpop.xlane.xlu1 %616 }
 0x320   : > { %v619_v44 = vsub.f32 %v611_v16, %v617_v43 }
 0x322   : > { %v622_v47 = vmul.f32 1.442695, %v619_v44  ;;  %v1126_v51 = vpop.eup %1125 }
 0x323   : > { %v727_v49 = vpop.xlane.xlu1 %726 }
 0x324   : > { %v731_v50 = vsub.f32 %v1592_v54, %v727_v49  ;;  %1129 = vpow2.f32 %v622_v47 }
 0x325   : > { %1131 = vpow2.f32 %v620_v48 }
 0x326   : > { %v1128_v56 = vpop.eup %1127  ;;  %v733_v57 = vmul.f32 1.442695, %v731_v50 }
 0x327   : > { %v730_v58 = vpop.xlane.xlu1 %729  ;;  %v520_v59 = vpack.c.bf16 %v1128_v56, %v1126_v51 }
 0x328   : > { %v732_v61 = vsub.f32 %v1596_v55, %v730_v58  ;;  %1133 = vpow2.f32 %v733_v57 }
 0x329   : > { %996 = vmatmul.mubr.msk.bf16.vlgmr.msra.gmra.mrb[4].mxu0 %vm256_vm0, %v520_v59 }
 0x32a   : > { %v735_v62 = vmul.f32 1.442695, %v732_v61  ;;  %1006 = vmatpush3.bf16.msra.mxu0 %v745_v60  ;;  %1007 = vmatprep.mubr.msk.bf16.mxu0 %vm1332_vm8, %v1325_v6  ;;  %v1334_v6 = vmov 8  }
 0x32b   : > { %v1111_v54 = vpop.permute.xlu1 %1110  ;;  %1119 = vset.pattern.permute.xlu1 %v1334_v6  ;;  %1120 = vset.pattern.permute.xlu0 %v1334_v6 }
 0x32c   : > { %1135 = vpow2.f32 %v735_v62  ;;  %v1113_v63 = vunpack.i.h.bf16 %v1111_v54  ;;  %v1112_v0 = vunpack.i.l.bf16 %v1111_v54 }
 0x32e   : > { %v631_v1 = vsel %vm412_vm1, %v1113_v63, 1.0  ;;  %v630_v2 = vsel %vm412_vm1, %v1112_v0, 1.0  ;;  %v1130_v3 = vpop.eup %1129 }
 0x32f   : > { %v632_v4 = vpack.c.bf16 %v631_v1, %v630_v2  ;;  %v1132_v5 = vpop.eup %1131 }
 0x330   : > { %v633_v55 = vpack.c.bf16 %v1130_v3, %v1132_v5 }
 0x331   : > { %1000 = vmatpush3.bf16.msra.mxu1 %v632_v4 }
 0x332   : > { %v1134_v7 = vpop.eup %1133 }
 0x334   : > { %1002 = vmatmul.mubr.msk.bf16.vlgmr.msra.gmra.mrb[4].mxu1 %vm256_vm0, %v633_v55 }
 0x336   : > { %v1136_v8 = vpop.eup %1135 }
 0x337   : > { %v746_v9 = vpack.c.bf16 %v1136_v8, %v1134_v7 }
 0x339   : > { %1008 = vmatmul.mubr.msk.bf16.vlgmr.msra.gmra.mrb[8].mxu0 %vm256_vm0, %v746_v9 }
 0x3c4   : > { %v454_v10 = vpop.f32.mrb[0].mxu1 }
 0x3c5   : > { %1137 = vrcp.f32 %v454_v10  ;;  %v991_v11 = vpop.f32.mrb[1].mxu1 }
 0x3c6   : > { %v1641_v13 = vpop.f32.mrb[2].mxu1 }
 0x3c7   : > { %v992_v14 = vpop.f32.mrb[3].mxu1 }
 0x3cf   : > { %v1138_v15 = vpop.eup %1137 }
 0x3d0   : > { %465 = vperm.xlu1 %1119, %v1138_v15  }
 0x3fc   : > { %v558_v16 = vpop.f32.mrb[4].mxu0 }
 0x3fd   : > { %1139 = vrcp.f32 %v558_v16  ;;  %v997_v17 = vpop.f32.mrb[5].mxu0 }
 0x3fe   : > { %v561_v18 = vpop.f32.mrb[6].mxu0 }
 0x3ff   : > { %v998_v19 = vpop.f32.mrb[7].mxu0  ;;  %1141 = vrcp.f32 %v561_v18 }
 0x407   : > { %v1140_v20 = vpop.eup %1139  ;;  %v671_v21 = vpop.f32.mrb[4].mxu1 }
 0x408   : > { %1143 = vrcp.f32 %v671_v21  ;;  %569 = vperm.xlu1 %1119, %v1140_v20   ;;  %v1003_v22 = vpop.f32.mrb[5].mxu1 }
 0x409   : > { %v674_v23 = vpop.f32.mrb[6].mxu1  ;;  %v1142_v25 = vpop.eup %1141 }
 0x40a   : > { %v1004_v24 = vpop.f32.mrb[7].mxu1  ;;  %1145 = vrcp.f32 %v674_v23 }
 0x40c   : > { %v784_v26 = vpop.f32.mrb[8].mxu0  ;;  %574 = vperm.xlu1 %1119, %v1142_v25  }
 0x40d   : > { %1147 = vrcp.f32 %v784_v26  ;;  %v1009_v27 = vpop.f32.mrb[9].mxu0 }
 0x40e   : > { %v787_v28 = vpop.f32.mrb[10].mxu0 }
 0x40f   : > { %1149 = vrcp.f32 %v787_v28  ;;  %v1010_v29 = vpop.f32.mrb[11].mxu0 }
 0x410   : > { %1151 = vrcp.f32 %v1641_v13 }
 0x412   : > { %v1144_v30 = vpop.eup %1143 }
 0x413   : > { %682 = vperm.xlu1 %1119, %v1144_v30  }
 0x414   : > { %v1146_v31 = vpop.eup %1145 }
 0x417   : > { %v1148_v12 = vpop.eup %1147  ;;  %687 = vperm.xlu1 %1119, %v1146_v31  }
 0x418   : > { %795 = vperm.xlu0 %1120, %v1148_v12  }
 0x419   : > { %v1150_v32 = vpop.eup %1149 }
 0x41a   : > { %v1152_v33 = vpop.eup %1151 }
 0x41b   : > { %800 = vperm.xlu1 %1119, %v1150_v32  }
 0x41f   : > { %470 = vperm.xlu1 %1119, %v1152_v33  }
 0x44f   : > { %v466_v34 = vpop.permute.xlu1 %465 }
 0x450   : > { %v473_v35 = vmul.f32 %v466_v34, %v454_v10 }
 0x452   : > { %475 = vst.msk [vmem:[%s1646_s30] sm:$0xff] %vm412_vm1, %v473_v35 }
 0x487   : > { %v570_v36 = vpop.permute.xlu1 %569 }
 0x488   : > { %v577_v37 = vmul.f32 %v570_v36, %v558_v16 }
 0x48a   : > { %581 = vrot.lane.b32.xlu0 %v577_v37, %s1335_s5 }
 0x48b   : > { %v575_v38 = vpop.permute.xlu1 %574 }
 0x48c   : > { %v578_v39 = vmul.f32 %v575_v38, %v561_v18 }
 0x48e   : > { %583 = vrot.lane.b32.xlu1 %v578_v39, %s1335_s5 }
 0x492   : > { %v683_v40 = vpop.permute.xlu1 %682 }
 0x493   : > { %v690_v41 = vmul.f32 %v683_v40, %v671_v21 }
 0x495   : > { %694 = vrot.lane.b32.xlu0 %v690_v41, %s1336_s6 }
 0x496   : > { %v688_v42 = vpop.permute.xlu1 %687 }
 0x497   : > { %v691_v43 = vmul.f32 %v688_v42, %v674_v23  ;;  %v796_v44 = vpop.permute.xlu0 %795 }
 0x498   : > { %v803_v45 = vmul.f32 %v796_v44, %v784_v26 }
 0x499   : > { %696 = vrot.lane.b32.xlu1 %v691_v43, %s1336_s6 }
 0x49a   : > { %807 = vrot.lane.b32.xlu0 %v803_v45, %s1337_s7  ;;  %v801_v46 = vpop.permute.xlu1 %800 }
 0x49b   : > { %v804_v47 = vmul.f32 %v801_v46, %v787_v28 }
 0x49d   : > { %809 = vrot.lane.b32.xlu1 %v804_v47, %s1337_s7 }
 0x49e   : > { %v471_v48 = vpop.permute.xlu1 %470 }
 0x49f   : > { %v474_v49 = vmul.f32 %v471_v48, %v1641_v13 }
 0x4a1   : > { %476 = vst.msk [vmem:[%s1646_s30 + $0x8] sm:$0xff] %vm412_vm1, %v474_v49 }
 0x4fc   : > { %v582_v50 = vpop.permute.xlu0 %581 }
 0x4fd   : > { %588 = vst.msk [vmem:[%s1646_s30] sm:$0xff] %vm587_vm13, %v582_v50 }
 0x500   : > { %v584_v51 = vpop.permute.xlu1 %583 }
 0x501   : > { %589 = vst.msk [vmem:[%s1646_s30 + $0x8] sm:$0xff] %vm587_vm13, %v584_v51 }
 0x507   : > { %v695_v52 = vpop.permute.xlu0 %694 }
 0x508   : > { %701 = vst.msk [vmem:[%s1646_s30] sm:$0xff] %vm700_vm14, %v695_v52 }
 0x50b   : > { %v697_v53 = vpop.permute.xlu1 %696 }
 0x50c   : > { %702 = vst.msk [vmem:[%s1646_s30 + $0x8] sm:$0xff] %vm700_vm14, %v697_v53  ;;  %v808_v56 = vpop.permute.xlu0 %807 }
 0x50d   : > { %814 = vst.msk [vmem:[%s1646_s30] sm:$0xff] %vm813_vm15, %v808_v56 }
 0x50f   : > { %v810_v57 = vpop.permute.xlu1 %809 }
 0x510   : > { %815 = vst.msk [vmem:[%s1646_s30 + $0x8] sm:$0xff] %vm813_vm15, %v810_v57 }
 0x511   : > { %1254 = shalt.err (!%p1251_p6)
}
 0x512   : > { %s1255_s10 = scalar_lea.hbm %s1665_s8, 256  ;;  %s1259_s23 = scalar_lea.hbm %s1715_s3, 1024 }
 0x513   : > { %p1256_p8 = scmp.ne.s32.totalorder %s1665_s8, %s1255_s10  ;;  %p1260_p4 = scmp.lt.u32.totalorder %s1665_s8, %s1715_s3 }
 0x514   : > { %p1261_p10 = scmp.lt.u32.totalorder %s1259_s23, %s1255_s10  ;;  %p1263_p3 = scmp.lt.u32.totalorder %s1255_s10, %s1665_s8 }
 0x515   : > { %p1257_p11 = pnand %p1256_p8, %p1446_p12 }
 0x516   : > { %p1262_p13 = por %p1261_p10, %p1260_p4 }
 0x517   : > { %p1258_p0 = pneg %p1257_p11 }
 0x518   : > { %p1264_p7 = por %p1263_p3, %p1262_p13 }
 0x51a   : > { %p1265_p9 = pnand %p1264_p7, %p1258_p0 }
 0x51c   : > { %1268 = shalt.err (!%p1265_p9)
}
 0x51d   : > { %s1339_s6 = smov 128  }
 0x51e   : > { %1023 = dma.vmem_to_hbm [thread:$0]  (%p1446_p12), %s1667_s0, 256, %s1665_s8, %s817_s9, %s1339_s6, %s1339_s6, %s1335_s5  }
 0x51f PF: > { %p1043_p1 = scmp.ge.s32.totalorder %s1315_s15, 2  ;;  %s845_s7 = sand.u32 1, %s1303_s12  }
 0x520   : > { %p1732_p5 = scmp.ne.s32.totalorder %s1721_s19, 0  ;;  %s846_s27 = scalar_lea.sflag [#allocation4], %s845_s7 }
 0x522   : > { %p1037_p2 = pnand %p1043_p1, %p1732_p5 }
 0x524   : > { %1298 = dma.done.wait (!%p1037_p2), %s846_s27, 256  }
 0x525   : > { %1300 = vsyncadd (!%p1037_p2), %s846_s27, 4294967040  ;;  %p19_p6 = scmp.ge.s32.totalorder %s1413_s24, 6   ;;  %s1733_s12 = smov %s1307_s13 }
 0x526   : > { %s1734_s13 = smov %s1311_s14  ;;  %s1735_s14 = smov %s1442_s17 }
 0x527   : > { %s1736_s15 = smov %s1413_s24  ;;  %21 = sbr.rel (!%p19_p6) target bundleno = 9 (0x9), region = 94 }
 0x52e   :  { %851 = vsyncpa [#allocation3], 1 }
 0x52f   :  { %853 = vsyncpa [#allocation3 + $0x1], 1 }
 0x530   :  { %854 = vsyncpa [#allocation6], 1 }
 0x531   :  { %856 = vsyncpa [#allocation6 + $0x1], 1 }
 0x532   :  { %857 = vsyncpa [#allocation4], 1 }
 0x533   :  { %859 = vsyncpa [#allocation4 + $0x1], 1 }

</bundles_post_ra>
